<compile_context>
chip_gen: v6e
topology: v6e:2x2x1
jax: 0.10.0
libtpu: 0.0.40
codegen_flags: <defaults>
</compile_context>

<pallas_src>
import functools

import jax
import jax.numpy as jnp
from jax.experimental import pallas as pl
from jax.experimental.pallas import tpu as pltpu

INPUT_SIZE = 5
HIDDEN = 128
OUTPUT_SIZE = 2
BN_EPS = 1e-5


def _round_up(v, m):
    return ((v + m - 1) // m) * m


def _mlp_kernel(x_ref,
                w1_ref, b1_ref,
                w2_ref, b2_ref,
                w3_ref, b3_ref,
                w4_ref, b4_ref,
                o_ref, *, fc1_on_vpu):
    cdt = w2_ref.dtype  # compute dtype of the MXU matmuls (bf16 by default)

    # ---- Layer 1: fc1 (bn1 pre-folded) -> relu. Dropout = identity. ----
    if fc1_on_vpu:
        # K=5 -> do it as 5 VPU broadcast-FMAs in f32; frees a full MXU pass
        # per 8-row slab.  w1 stays f32 on this path.
        x = x_ref[...]                                   # (TB, 5) f32
        acc = x[:, 0:1] * w1_ref[0:1, :]                 # (TB,1)*(1,128) -> (TB,128)
        for k in range(1, INPUT_SIZE):
            acc = acc + x[:, k:k + 1] * w1_ref[k:k + 1, :]
        h = acc + b1_ref[...]
    else:
        h = jnp.dot(x_ref[...].astype(cdt), w1_ref[...],
                    preferred_element_type=jnp.float32)
        h = h + b1_ref[...]
    h = jnp.maximum(h, 0.0)

    # ---- Layers 2 & 3: 128x128 matmuls (bn2/bn3 folded), bf16 MXU inputs,
    # f32 accumulation.  Weights arrive pre-cast; only the (TB,128) activation
    # is cast per step. ----
    h = jnp.dot(h.astype(cdt), w2_ref[...], preferred_element_type=jnp.float32)
    h = jnp.maximum(h + b2_ref[...], 0.0)

    h = jnp.dot(h.astype(cdt), w3_ref[...], preferred_element_type=jnp.float32)
    h = jnp.maximum(h + b3_ref[...], 0.0)

    # ---- Layer 4: fc4, no activation.  OUTPUT_SIZE=2 -> masked store; the
    # output path is negligible next to the matmuls (per review: don't
    # restructure for lane-dense output). ----
    o_ref[...] = (jnp.dot(h.astype(w4_ref.dtype), w4_ref[...],
                          preferred_element_type=jnp.float32)
                  + b4_ref[...])


def _pick_batch_tile(B, block_batch):
    """Batch tile: big enough to amortize per-step overhead, but at least two
    grid steps for moderate batches so v7x's 2 TensorCores both get work."""
    if B <= 8:
        return B
    half = max(8, _round_up(pl.cdiv(B, 2), 8))
    cap = max(8, _round_up(block_batch, 8))
    return min(cap, half)


def _derive_vmem_limit(TB):
    """VMEM budget derived from the tile: double-buffered lane-padded (TB,128)
    in/out slabs + activation temporaries + weights/headroom.  Capped at 48 MiB
    so it always compiles on v7x (64 MiB physical)."""
    tile_bytes = TB * 128 * 4                      # one lane-padded f32 slab
    need = 2 * 2 * tile_bytes + 4 * tile_bytes + (2 << 20)
    return int(min(max(need, 8 << 20), 48 << 20))


def simple_model_forward(x, params, *, block_batch=4096, use_bf16=True,
                         fc1_on_vpu=True):
    """Fused MLP forward. x: (B, INPUT_SIZE) float32 -> (B, OUTPUT_SIZE) float32."""
    if x.ndim != 2 or x.shape[1] != INPUT_SIZE:
        raise ValueError(f"Expected input to have shape (batch_size, {INPUT_SIZE}).")
    B = x.shape[0]

    TB = _pick_batch_tile(B, block_batch)
    grid = (pl.cdiv(B, TB),)

    # Pre-cast weights in the wrapper (tiny, ~66 KiB) so the resident refs are
    # already in the MXU compute dtype — no per-grid-step VPU cast of constants.
    # (For production, cast once outside the step function.)
    cdt = jnp.bfloat16 if use_bf16 else jnp.float32
    w1 = params["w1"] if fc1_on_vpu else params["w1"].astype(cdt)
    w2 = params["w2"].astype(cdt)
    w3 = params["w3"].astype(cdt)
    w4 = params["w4"].astype(cdt)
    b1, b2, b3, b4 = params["b1"], params["b2"], params["b3"], params["b4"]

    const = lambda i: (0, 0)  # weights/biases stay resident across grid steps
    in_specs = [
        pl.BlockSpec((TB, INPUT_SIZE), lambda i: (i, 0)),
        pl.BlockSpec((INPUT_SIZE, HIDDEN), const),
        pl.BlockSpec((1, HIDDEN), const),
        pl.BlockSpec((HIDDEN, HIDDEN), const),
        pl.BlockSpec((1, HIDDEN), const),
        pl.BlockSpec((HIDDEN, HIDDEN), const),
        pl.BlockSpec((1, HIDDEN), const),
        pl.BlockSpec((HIDDEN, OUTPUT_SIZE), const),
        pl.BlockSpec((1, OUTPUT_SIZE), const),
    ]
    out_specs = pl.BlockSpec((TB, OUTPUT_SIZE), lambda i: (i, 0))

    flops = 2 * B * (INPUT_SIZE * HIDDEN + 2 * HIDDEN * HIDDEN
                     + HIDDEN * OUTPUT_SIZE)
    weight_bytes = sum(int(a.size) * a.dtype.itemsize
                       for a in (w1, b1, w2, b2, w3, b3, w4, b4))
    cost = pl.CostEstimate(
        flops=flops,
        transcendentals=0,
        bytes_accessed=4 * B * (INPUT_SIZE + OUTPUT_SIZE) + weight_bytes,
    )

    kernel = functools.partial(_mlp_kernel, fc1_on_vpu=fc1_on_vpu)

    return pl.pallas_call(
        kernel,
        out_shape=jax.ShapeDtypeStruct((B, OUTPUT_SIZE), jnp.float32),
        grid=grid,
        in_specs=in_specs,
        out_specs=out_specs,
        compiler_params=pltpu.CompilerParams(
            dimension_semantics=("parallel",),        # shard batch across TCs (v7x)
            vmem_limit_bytes=_derive_vmem_limit(TB),  # tile-derived, v7x-safe cap
        ),
        cost_estimate=cost,
    )(x, w1, b1, w2, b2, w3, b3, w4, b4)


def make_params(key):
    """Torch-style init; returns (raw torch-layout params, folded kernel params).

    Linear weights are (out, in) like torch; BatchNorm default init
    (gamma=1, beta=0, running_mean=0, running_var=1, eps=1e-5, eval mode).
    Kernel params fold BN into the weights: w' = (w * s).T (in, out),
    b' = b * s + t with s = gamma/sqrt(var+eps), t = beta - mean*s.
    """
    ks = jax.random.split(key, 8)

    def linear(kw, kb, fan_in, fan_out):
        bound = 1.0 / jnp.sqrt(jnp.float32(fan_in))
        w = jax.random.uniform(kw, (fan_out, fan_in), jnp.float32, -bound, bound)
        b = jax.random.uniform(kb, (fan_out,), jnp.float32, -bound, bound)
        return w, b

    W1, B1 = linear(ks[0], ks[1], INPUT_SIZE, HIDDEN)
    W2, B2 = linear(ks[2], ks[3], HIDDEN, HIDDEN)
    W3, B3 = linear(ks[4], ks[5], HIDDEN, HIDDEN)
    W4, B4 = linear(ks[6], ks[7], HIDDEN, OUTPUT_SIZE)

    def bn(h):
        return dict(gamma=jnp.ones((h,), jnp.float32),
                    beta=jnp.zeros((h,), jnp.float32),
                    mean=jnp.zeros((h,), jnp.float32),
                    var=jnp.ones((h,), jnp.float32))

    raw = dict(W1=W1, B1=B1, W2=W2, B2=B2, W3=W3, B3=B3, W4=W4, B4=B4,
               bn1=bn(HIDDEN), bn2=bn(HIDDEN), bn3=bn(HIDDEN))

    def fold(W, B, bnp):
        s = bnp["gamma"] / jnp.sqrt(bnp["var"] + BN_EPS)   # (out,)
        t = bnp["beta"] - bnp["mean"] * s
        return (W * s[:, None]).T, (B * s + t).reshape(1, -1)

    w1, b1 = fold(W1, B1, raw["bn1"])
    w2, b2 = fold(W2, B2, raw["bn2"])
    w3, b3 = fold(W3, B3, raw["bn3"])
    w4, b4 = W4.T, B4.reshape(1, -1)

    folded = dict(w1=w1, b1=b1, w2=w2, b2=b2, w3=w3, b3=b3, w4=w4, b4=b4)
    return raw, folded


def reference_forward(x, raw):
    """Pure-JAX mirror of the PyTorch eval-mode forward (unfolded BN, f32)."""
    def bn_eval(h, bnp):
        return ((h - bnp["mean"]) / jnp.sqrt(bnp["var"] + BN_EPS)
                * bnp["gamma"] + bnp["beta"])

    h = jnp.maximum(bn_eval(x @ raw["W1"].T + raw["B1"], raw["bn1"]), 0.0)
    h = jnp.maximum(bn_eval(h @ raw["W2"].T + raw["B2"], raw["bn2"]), 0.0)
    h = jnp.maximum(bn_eval(h @ raw["W3"].T + raw["B3"], raw["bn3"]), 0.0)
    return h @ raw["W4"].T + raw["B4"]


if __name__ == "__main__":
    key = jax.random.PRNGKey(0)
    k_x1, k_x2, k_x3, k_p = jax.random.split(key, 4)

    raw, params = make_params(k_p)

    # 1) f32/MXU path at small batch: tight-tolerance correctness anchor.
    x_small = jax.random.normal(k_x1, (8, INPUT_SIZE), jnp.float32)
    out_f32 = jax.block_until_ready(
        simple_model_forward(x_small, params, use_bf16=False, fc1_on_vpu=False))
    ref_small = reference_forward(x_small, raw)
    assert out_f32.shape == (8, OUTPUT_SIZE)
    assert jnp.allclose(out_f32, ref_small, atol=1e-4, rtol=1e-4), \
        "f32-path mismatch vs JAX reference"

    # 2) Default fast path (bf16 MXU + VPU layer-1), batch split into 2 grid
    #    steps (TB=32) so both v7x TensorCores get work.
    x_big = jax.random.normal(k_x2, (64, INPUT_SIZE), jnp.float32)
    out_big = jax.block_until_ready(simple_model_forward(x_big, params))
    ref_big = reference_forward(x_big, raw)
    assert out_big.shape == (64, OUTPUT_SIZE)
    assert jnp.allclose(out_big, ref_big, atol=5e-2, rtol=5e-2), \
        "bf16-path mismatch vs JAX reference"

    # 3) Ragged batch (B not a multiple of the tile): exercises partial-block
    #    clipping on the last grid step.
    x_rag = jax.random.normal(k_x3, (20, INPUT_SIZE), jnp.float32)
    out_rag = jax.block_until_ready(simple_model_forward(x_rag, params))
    ref_rag = reference_forward(x_rag, raw)
    assert out_rag.shape == (20, OUTPUT_SIZE)
    assert jnp.allclose(out_rag, ref_rag, atol=5e-2, rtol=5e-2), \
        "ragged-batch mismatch vs JAX reference"

    print("KERNEL_OK")
</pallas_src>

<mosaic_0001>
module attributes {stable_mosaic.version = 11 : i64} {
  func.func @_mlp_kernel(%arg0: i32, %arg1: memref<8x5xf32, #tpu.memory_space<vmem>>, %arg2: memref<5x128xf32, #tpu.memory_space<vmem>>, %arg3: memref<1x128xf32, #tpu.memory_space<vmem>>, %arg4: memref<128x128xf32, #tpu.memory_space<vmem>>, %arg5: memref<1x128xf32, #tpu.memory_space<vmem>>, %arg6: memref<128x128xf32, #tpu.memory_space<vmem>>, %arg7: memref<1x128xf32, #tpu.memory_space<vmem>>, %arg8: memref<128x2xf32, #tpu.memory_space<vmem>>, %arg9: memref<1x2xf32, #tpu.memory_space<vmem>>, %arg10: memref<8x2xf32, #tpu.memory_space<vmem>>) attributes {dimension_semantics = [#tpu.dimension_semantics<parallel>], iteration_bounds = array<i64: 1>, scalar_prefetch = 0 : i64, scratch_operands = 0 : i64, tpu.core_type = #tpu.core_type<tc>, window_params = [{transform_indices = @transform_0, window_bounds = array<i64: 8, 5>}, {pipeline_mode = #tpu.pipeline_mode<synchronous>, transform_indices = @transform_1, window_bounds = array<i64: 5, 128>}, {pipeline_mode = #tpu.pipeline_mode<synchronous>, transform_indices = @transform_2, window_bounds = array<i64: 1, 128>}, {pipeline_mode = #tpu.pipeline_mode<synchronous>, transform_indices = @transform_3, window_bounds = array<i64: 128, 128>}, {pipeline_mode = #tpu.pipeline_mode<synchronous>, transform_indices = @transform_4, window_bounds = array<i64: 1, 128>}, {pipeline_mode = #tpu.pipeline_mode<synchronous>, transform_indices = @transform_5, window_bounds = array<i64: 128, 128>}, {pipeline_mode = #tpu.pipeline_mode<synchronous>, transform_indices = @transform_6, window_bounds = array<i64: 1, 128>}, {pipeline_mode = #tpu.pipeline_mode<synchronous>, transform_indices = @transform_7, window_bounds = array<i64: 128, 2>}, {pipeline_mode = #tpu.pipeline_mode<synchronous>, transform_indices = @transform_8, window_bounds = array<i64: 1, 2>}, {transform_indices = @transform_9, window_bounds = array<i64: 8, 2>}]} {
    %c0 = arith.constant 0 : index
    %c0_0 = arith.constant 0 : index
    %0 = vector.load %arg1[%c0, %c0_0] : memref<8x5xf32, #tpu.memory_space<vmem>>, vector<8x5xf32>
    %c0_1 = arith.constant 0 : index
    %c0_2 = arith.constant 0 : index
    %1 = vector.load %arg2[%c0_1, %c0_2] : memref<5x128xf32, #tpu.memory_space<vmem>>, vector<5x128xf32>
    %cst = arith.constant dense<0.000000e+00> : vector<8x128xf32>
    %2 = tpu.matmul %0, %1, %cst {dimension_numbers = #tpu.dot_dimension_numbers<[1], [0], [0], [1], [0, 0, 1, 1], [], []>} : vector<8x5xf32>, vector<5x128xf32>, vector<8x128xf32> -> vector<8x128xf32>
    %c0_3 = arith.constant 0 : index
    %c0_4 = arith.constant 0 : index
    %3 = vector.load %arg3[%c0_3, %c0_4] : memref<1x128xf32, #tpu.memory_space<vmem>>, vector<1x128xf32>
    %4 = vector.broadcast %3 : vector<1x128xf32> to vector<8x128xf32>
    %5 = arith.addf %2, %4 : vector<8x128xf32>
    %cst_5 = arith.constant 0.000000e+00 : f32
    %6 = vector.broadcast %cst_5 : f32 to vector<8x128xf32>
    %7 = arith.maximumf %5, %6 : vector<8x128xf32>
    %c0_6 = arith.constant 0 : index
    %c0_7 = arith.constant 0 : index
    %8 = vector.load %arg4[%c0_6, %c0_7] : memref<128x128xf32, #tpu.memory_space<vmem>>, vector<128x128xf32>
    %cst_8 = arith.constant dense<0.000000e+00> : vector<8x128xf32>
    %9 = tpu.matmul %7, %8, %cst_8 {dimension_numbers = #tpu.dot_dimension_numbers<[1], [0], [0], [1], [0, 0, 1, 1], [], []>} : vector<8x128xf32>, vector<128x128xf32>, vector<8x128xf32> -> vector<8x128xf32>
    %c0_9 = arith.constant 0 : index
    %c0_10 = arith.constant 0 : index
    %10 = vector.load %arg5[%c0_9, %c0_10] : memref<1x128xf32, #tpu.memory_space<vmem>>, vector<1x128xf32>
    %11 = vector.broadcast %10 : vector<1x128xf32> to vector<8x128xf32>
    %12 = arith.addf %9, %11 : vector<8x128xf32>
    %cst_11 = arith.constant 0.000000e+00 : f32
    %13 = vector.broadcast %cst_11 : f32 to vector<8x128xf32>
    %14 = arith.maximumf %12, %13 : vector<8x128xf32>
    %c0_12 = arith.constant 0 : index
    %c0_13 = arith.constant 0 : index
    %15 = vector.load %arg6[%c0_12, %c0_13] : memref<128x128xf32, #tpu.memory_space<vmem>>, vector<128x128xf32>
    %cst_14 = arith.constant dense<0.000000e+00> : vector<8x128xf32>
    %16 = tpu.matmul %14, %15, %cst_14 {dimension_numbers = #tpu.dot_dimension_numbers<[1], [0], [0], [1], [0, 0, 1, 1], [], []>} : vector<8x128xf32>, vector<128x128xf32>, vector<8x128xf32> -> vector<8x128xf32>
    %c0_15 = arith.constant 0 : index
    %c0_16 = arith.constant 0 : index
    %17 = vector.load %arg7[%c0_15, %c0_16] : memref<1x128xf32, #tpu.memory_space<vmem>>, vector<1x128xf32>
    %18 = vector.broadcast %17 : vector<1x128xf32> to vector<8x128xf32>
    %19 = arith.addf %16, %18 : vector<8x128xf32>
    %cst_17 = arith.constant 0.000000e+00 : f32
    %20 = vector.broadcast %cst_17 : f32 to vector<8x128xf32>
    %21 = arith.maximumf %19, %20 : vector<8x128xf32>
    %c0_18 = arith.constant 0 : index
    %c0_19 = arith.constant 0 : index
    %22 = vector.load %arg8[%c0_18, %c0_19] : memref<128x2xf32, #tpu.memory_space<vmem>>, vector<128x2xf32>
    %cst_20 = arith.constant dense<0.000000e+00> : vector<8x2xf32>
    %23 = tpu.matmul %21, %22, %cst_20 {dimension_numbers = #tpu.dot_dimension_numbers<[1], [0], [0], [1], [0, 0, 1, 1], [], []>} : vector<8x128xf32>, vector<128x2xf32>, vector<8x2xf32> -> vector<8x2xf32>
    %c0_21 = arith.constant 0 : index
    %c0_22 = arith.constant 0 : index
    %24 = vector.load %arg9[%c0_21, %c0_22] : memref<1x2xf32, #tpu.memory_space<vmem>>, vector<1x2xf32>
    %25 = vector.broadcast %24 : vector<1x2xf32> to vector<8x2xf32>
    %26 = arith.addf %23, %25 : vector<8x2xf32>
    %c0_23 = arith.constant 0 : index
    %c0_24 = arith.constant 0 : index
    %27 = vector.load %arg10[%c0_23, %c0_24] : memref<8x2xf32, #tpu.memory_space<vmem>>, vector<8x2xf32>
    tpu.vector_store %arg10[%c0_23, %c0_24], %26 {strides = array<i32>} : memref<8x2xf32, #tpu.memory_space<vmem>>, vector<8x2xf32>,
    return
  }
  func.func @transform_0(%arg0: i32) -> (i32, i32) {
    %c0_i32 = arith.constant 0 : i32
    %c0_i32_0 = arith.constant 0 : i32
    return %arg0, %c0_i32 : i32, i32
  }
  func.func @transform_1(%arg0: i32) -> (i32, i32) {
    %c0_i32 = arith.constant 0 : i32
    %c0_i32_0 = arith.constant 0 : i32
    %c0_i32_1 = arith.constant 0 : i32
    return %c0_i32, %c0_i32_0 : i32, i32
  }
  func.func @transform_2(%arg0: i32) -> (i32, i32) {
    %c0_i32 = arith.constant 0 : i32
    %c0_i32_0 = arith.constant 0 : i32
    %c0_i32_1 = arith.constant 0 : i32
    return %c0_i32, %c0_i32_0 : i32, i32
  }
  func.func @transform_3(%arg0: i32) -> (i32, i32) {
    %c0_i32 = arith.constant 0 : i32
    %c0_i32_0 = arith.constant 0 : i32
    %c0_i32_1 = arith.constant 0 : i32
    return %c0_i32, %c0_i32_0 : i32, i32
  }
  func.func @transform_4(%arg0: i32) -> (i32, i32) {
    %c0_i32 = arith.constant 0 : i32
    %c0_i32_0 = arith.constant 0 : i32
    %c0_i32_1 = arith.constant 0 : i32
    return %c0_i32, %c0_i32_0 : i32, i32
  }
  func.func @transform_5(%arg0: i32) -> (i32, i32) {
    %c0_i32 = arith.constant 0 : i32
    %c0_i32_0 = arith.constant 0 : i32
    %c0_i32_1 = arith.constant 0 : i32
    return %c0_i32, %c0_i32_0 : i32, i32
  }
  func.func @transform_6(%arg0: i32) -> (i32, i32) {
    %c0_i32 = arith.constant 0 : i32
    %c0_i32_0 = arith.constant 0 : i32
    %c0_i32_1 = arith.constant 0 : i32
    return %c0_i32, %c0_i32_0 : i32, i32
  }
  func.func @transform_7(%arg0: i32) -> (i32, i32) {
    %c0_i32 = arith.constant 0 : i32
    %c0_i32_0 = arith.constant 0 : i32
    %c0_i32_1 = arith.constant 0 : i32
    return %c0_i32, %c0_i32_0 : i32, i32
  }
  func.func @transform_8(%arg0: i32) -> (i32, i32) {
    %c0_i32 = arith.constant 0 : i32
    %c0_i32_0 = arith.constant 0 : i32
    %c0_i32_1 = arith.constant 0 : i32
    return %c0_i32, %c0_i32_0 : i32, i32
  }
  func.func @transform_9(%arg0: i32) -> (i32, i32) {
    %c0_i32 = arith.constant 0 : i32
    %c0_i32_0 = arith.constant 0 : i32
    return %arg0, %c0_i32 : i32, i32
  }
}

</mosaic_0001>

<bundles_post_ra>
// kernel: tpu_custom_call.1
= control target key start
LH: loop header
LB: loop body
LE: loop exit
PB: predicated region body
PF: predicated region fallthrough
CT: control target
= control target key end

     0   :  { %14 = vsyncpa [#allocation3], 0  ;;  %s920_s0 = inlined_call_operand.hbm [shape: f32[8,5], index: 0, kind: input, shape index: {}]   ;;  %s921_s1 = inlined_call_operand.hbm [shape: f32[5,128], index: 1, kind: input, shape index: {}]   ;;  %s922_s2 = inlined_call_operand.vmem [shape: f32[1,128], index: 2, kind: input, shape index: {}]   ;;  %s923_s3 = inlined_call_operand.vmem [shape: f32[128,128], index: 3, kind: input, shape index: {}]   ;;  %s924_s4 = inlined_call_operand.vmem [shape: f32[1,128], index: 4, kind: input, shape index: {}]   ;;  %s925_s5 = inlined_call_operand.hbm [shape: f32[128,128], index: 5, kind: input, shape index: {}]   ;;  %s926_s6 = inlined_call_operand.vmem [shape: f32[1,128], index: 6, kind: input, shape index: {}]   ;;  %s927_s7 = inlined_call_operand.vmem [shape: f32[128,2], index: 7, kind: input, shape index: {}]   ;;  %s928_s8 = inlined_call_operand.vmem [shape: f32[1,2], index: 8, kind: input, shape index: {}]   ;;  %s929_s9 = inlined_call_operand.vmem [shape: f32[8,2], index: 9, kind: output, shape index: {}]  }
   0x1   :  { %15 = vsyncpa [#allocation5], 0  ;;  %s686_s30 = smov [#allocation4]   ;;  %s687_s11 = smov [#allocation2]  }
   0x2   :  { %s32_s10 = sshll.u32 %s686_s30, 4  ;;  %s22_s12 = sshll.u32 %s687_s11, 4  ;;  %s33_s10 = int_to_ptr.vmem [resolvable:$true] %s32_s10  ;;  %s23_s12 = int_to_ptr.vmem [resolvable:$true] %s22_s12 }
   0x3   :  { %s630_s13 = scalar_lea.vmem %s33_s10, 128  ;;  %p635_p1 = scmp.lt.s32.totalorder %s33_s10, %s33_s10 }
   0x4   :  { %p631_p0 = scmp.ne.s32.totalorder %s33_s10, %s630_s13  ;;  %p636_p2 = scmp.lt.s32.totalorder %s630_s13, %s630_s13 }
   0x6   :  { %p637_p3 = por %p636_p2, %p635_p1 }
   0x8   :  { %p638_p4 = pnand %p637_p3, %p631_p0 }
   0xa   :  { %641 = shalt.err (!%p638_p4)
}
   0xb   :  { %35 = dma.hbm_to_vmem [thread:$0]  %s921_s1, 128, %s33_s10, [#allocation5]  }
   0xc   :  { %s650_s16 = scalar_lea.vmem %s23_s12, 128  ;;  %p655_p6 = scmp.lt.s32.totalorder %s23_s12, %s23_s12 }
   0xd   :  { %p651_p5 = scmp.ne.s32.totalorder %s23_s12, %s650_s16  ;;  %p656_p7 = scmp.lt.s32.totalorder %s650_s16, %s650_s16 }
   0xf   :  { %p657_p8 = por %p656_p7, %p655_p6 }
  0x11   :  { %p658_p9 = pnand %p657_p8, %p651_p5 }
  0x13   :  { %661 = shalt.err (!%p658_p9)
}
  0x14   :  { %25 = dma.hbm_to_vmem [thread:$0]  %s920_s0, 128, %s23_s12, [#allocation3]  }
  0x15   :  { %s688_s19 = smov [#allocation6]  }
  0x16   :  { %s47_s20 = sshll.u32 %s688_s19, 4  ;;  %s48_s20 = int_to_ptr.vmem [resolvable:$true] %s47_s20 }
  0x17   :  { %s670_s21 = scalar_lea.vmem %s48_s20, 2048  ;;  %p675_p11 = scmp.lt.s32.totalorder %s48_s20, %s48_s20 }
  0x18   :  { %p671_p10 = scmp.ne.s32.totalorder %s48_s20, %s670_s21  ;;  %p676_p12 = scmp.lt.s32.totalorder %s670_s21, %s670_s21 }
  0x1a   :  { %p677_p13 = por %p676_p12, %p675_p11 }
  0x1c   :  { %p678_p0 = pnand %p677_p13, %p671_p10 }
  0x1e   :  { %681 = shalt.err (!%p678_p0)
}
  0x1f   :  { %s689_s1 = smov 128   ;;  %s690_s22 = smov 8  }
  0x20   :  { %53 = dma.hbm_to_vmem [thread:$0]  %s925_s5, 2048, %s48_s20, [#allocation5], %s689_s1, %s689_s1, %s690_s22  }
  0x21   :  { %682 = dma.done.wait [#allocation3], 128  }
  0x22   :  { %683 = vsyncadd [#allocation3], 4294967168 }
  0x23   :  { %684 = dma.done.wait [#allocation5], 2176  }
  0x24   :  { %685 = vsyncadd [#allocation5], 4294965120  ;;  %v691_v0 = vmov 0.0   ;;  %vm692_vm0 = vmmov 0   ;;  %vm82_vm1 = vcmask 1044480   ;;  %vm78_vm2 = vcmask 39936  }
  0x25   :  { %505 = vmatprep.subr.mxu0 %v691_v0  ;;  %507 = vmatprep.mubr.msk.f32.mxu0 %vm692_vm0, %v691_v0  ;;  %v70_v1 = vld [vmem:[#allocation4] sm:$0x1f]  ;;  %v69_v2 = vld [vmem:[#allocation2] sm:$0xff]  ;;  %v172_v3 = vld [vmem:[%s923_s3 + $0x78] sm:$0xff]  ;;  %vm438_vm3 = vcmask 15360  }
  0x26   :  { %510 = vmatprep.subr.mxu1 %v691_v0  ;;  %542 = vmatprep.mubr.msk.f32.mxu1 %vm692_vm0, %v691_v0  ;;  %v171_v4 = vld [vmem:[%s923_s3 + $0x70] sm:$0xff]  ;;  %v170_v5 = vld [vmem:[%s923_s3 + $0x68] sm:$0xff]  ;;  %v169_v6 = vld [vmem:[%s923_s3 + $0x60] sm:$0xff] }
  0x27   :  { %506 = vmatpush3.msk.msra.mxu0 %vm82_vm1, %v70_v1  ;;  %511 = vmatpush3.msra.mxu1 %v172_v3  ;;  %v168_v7 = vld [vmem:[%s923_s3 + $0x58] sm:$0xff]  ;;  %v167_v8 = vld [vmem:[%s923_s3 + $0x50] sm:$0xff]  ;;  %v166_v9 = vld [vmem:[%s923_s3 + $0x48] sm:$0xff] }
  0x28   :  { %508 = vmatmul.mubr.msk.f32.vlgmr.msra.gmra.mxu0 %vm78_vm2, %v69_v2  ;;  %512 = vmatprep.subr.mxu1 %v691_v0  ;;  %v165_v10 = vld [vmem:[%s923_s3 + $0x40] sm:$0xff]  ;;  %v164_v11 = vld [vmem:[%s923_s3 + $0x38] sm:$0xff]  ;;  %v163_v12 = vld [vmem:[%s923_s3 + $0x30] sm:$0xff] }
  0x29   :  { %513 = vmatpush3.msra.mxu1 %v171_v4  ;;  %545 = vmatprep.subr.mxu0 %v691_v0  ;;  %v162_v13 = vld [vmem:[%s923_s3 + $0x28] sm:$0xff]  ;;  %v161_v14 = vld [vmem:[%s923_s3 + $0x20] sm:$0xff]  ;;  %v160_v15 = vld [vmem:[%s923_s3 + $0x18] sm:$0xff] }
  0x2a   :  { %514 = vmatprep.subr.mxu1 %v691_v0  ;;  %577 = vmatprep.mubr.msk.f32.mxu0 %vm692_vm0, %v691_v0  ;;  %v159_v16 = vld [vmem:[%s923_s3 + $0x10] sm:$0xff]  ;;  %v158_v17 = vld [vmem:[%s923_s3 + $0x8] sm:$0xff]  ;;  %v157_v18 = vld [vmem:[%s923_s3] sm:$0xff] }
  0x2b   :  { %515 = vmatpush3.msra.mxu1 %v170_v5  ;;  %v266_v19 = vld [vmem:[#allocation6 + $0x78] sm:$0xff]  ;;  %v265_v20 = vld [vmem:[#allocation6 + $0x70] sm:$0xff]  ;;  %v264_v21 = vld [vmem:[#allocation6 + $0x68] sm:$0xff] }
  0x2c   :  { %516 = vmatprep.subr.mxu1 %v691_v0  ;;  %546 = vmatpush3.msra.mxu0 %v266_v19  ;;  %v263_v22 = vld [vmem:[#allocation6 + $0x60] sm:$0xff]  ;;  %v262_v23 = vld [vmem:[#allocation6 + $0x58] sm:$0xff]  ;;  %v261_v24 = vld [vmem:[#allocation6 + $0x50] sm:$0xff] }
  0x2d   :  { %517 = vmatpush3.msra.mxu1 %v169_v6  ;;  %547 = vmatprep.subr.mxu0 %v691_v0  ;;  %v260_v25 = vld [vmem:[#allocation6 + $0x48] sm:$0xff]  ;;  %v259_v26 = vld [vmem:[#allocation6 + $0x40] sm:$0xff]  ;;  %v258_v27 = vld [vmem:[#allocation6 + $0x38] sm:$0xff] }
  0x2e   :  { %518 = vmatprep.subr.mxu1 %v691_v0  ;;  %548 = vmatpush3.msra.mxu0 %v265_v20  ;;  %v257_v28 = vld [vmem:[#allocation6 + $0x30] sm:$0xff]  ;;  %v256_v29 = vld [vmem:[#allocation6 + $0x28] sm:$0xff]  ;;  %v255_v30 = vld [vmem:[#allocation6 + $0x20] sm:$0xff] }
  0x2f   :  { %519 = vmatpush3.msra.mxu1 %v168_v7  ;;  %549 = vmatprep.subr.mxu0 %v691_v0  ;;  %v254_v31 = vld [vmem:[#allocation6 + $0x18] sm:$0xff]  ;;  %v446_v32 = vld [vmem:[%s922_s2] ss:$0 sm:$0xff]  ;;  %v252_v38 = vld [vmem:[#allocation6 + $0x8] sm:$0xff] }
  0x30   :  { %520 = vmatprep.subr.mxu1 %v691_v0  ;;  %550 = vmatpush3.msra.mxu0 %v264_v21  ;;  %v253_v37 = vld [vmem:[#allocation6 + $0x10] sm:$0xff]  ;;  %v251_v39 = vld [vmem:[#allocation6] sm:$0xff]  ;;  %v360_v40 = vld [vmem:[%s927_s7 + $0x78] sm:$0xff] }
  0x31   :  { %521 = vmatpush3.msra.mxu1 %v167_v8  ;;  %551 = vmatprep.subr.mxu0 %v691_v0  ;;  %v359_v41 = vld [vmem:[%s927_s7 + $0x70] sm:$0xff]  ;;  %v358_v42 = vld [vmem:[%s927_s7 + $0x68] sm:$0xff]  ;;  %v357_v43 = vld [vmem:[%s927_s7 + $0x60] sm:$0xff] }
  0x32   :  { %522 = vmatprep.subr.mxu1 %v691_v0  ;;  %552 = vmatpush3.msra.mxu0 %v263_v22  ;;  %v356_v44 = vld [vmem:[%s927_s7 + $0x58] sm:$0xff]  ;;  %v355_v45 = vld [vmem:[%s927_s7 + $0x50] sm:$0xff]  ;;  %v354_v46 = vld [vmem:[%s927_s7 + $0x48] sm:$0xff] }
  0x33   :  { %523 = vmatpush3.msra.mxu1 %v166_v9  ;;  %553 = vmatprep.subr.mxu0 %v691_v0  ;;  %v353_v47 = vld [vmem:[%s927_s7 + $0x40] sm:$0xff]  ;;  %v352_v48 = vld [vmem:[%s927_s7 + $0x38] sm:$0xff]  ;;  %v351_v49 = vld [vmem:[%s927_s7 + $0x30] sm:$0xff] }
  0x34   :  { %524 = vmatprep.subr.mxu1 %v691_v0  ;;  %554 = vmatpush3.msra.mxu0 %v262_v23  ;;  %v350_v50 = vld [vmem:[%s927_s7 + $0x28] sm:$0xff]  ;;  %v349_v51 = vld [vmem:[%s927_s7 + $0x20] sm:$0xff]  ;;  %v348_v52 = vld [vmem:[%s927_s7 + $0x18] sm:$0xff] }
  0x35   :  { %525 = vmatpush3.msra.mxu1 %v165_v10  ;;  %555 = vmatprep.subr.mxu0 %v691_v0  ;;  %v449_v53 = vld [vmem:[%s924_s4] ss:$0 sm:$0xff]  ;;  %v347_v58 = vld [vmem:[%s927_s7 + $0x10] sm:$0xff]  ;;  %v346_v59 = vld [vmem:[%s927_s7 + $0x8] sm:$0xff] }
  0x36   :  { %526 = vmatprep.subr.mxu1 %v691_v0  ;;  %556 = vmatpush3.msra.mxu0 %v261_v24  ;;  %v345_v60 = vld [vmem:[%s927_s7] sm:$0xff] }
  0x37   :  { %527 = vmatpush3.msra.mxu1 %v164_v11  ;;  %557 = vmatprep.subr.mxu0 %v691_v0  ;;  %v450_v61 = vld [vmem:[%s926_s6] ss:$0 sm:$0xff] }
  0x38   :  { %528 = vmatprep.subr.mxu1 %v691_v0  ;;  %558 = vmatpush3.msra.mxu0 %v260_v25  ;;  %v451_v3 = vld [vmem:[%s928_s8] ss:$0 sm:$0xff] }
  0x39   :  { %529 = vmatpush3.msra.mxu1 %v163_v12  ;;  %559 = vmatprep.subr.mxu0 %v691_v0 }
  0x3a   :  { %530 = vmatprep.subr.mxu1 %v691_v0  ;;  %560 = vmatpush3.msra.mxu0 %v259_v26 }
  0x3b   :  { %531 = vmatpush3.msra.mxu1 %v162_v13  ;;  %561 = vmatprep.subr.mxu0 %v691_v0 }
  0x3c   :  { %532 = vmatprep.subr.mxu1 %v691_v0  ;;  %562 = vmatpush3.msra.mxu0 %v258_v27 }
  0x3d   :  { %533 = vmatpush3.msra.mxu1 %v161_v14  ;;  %563 = vmatprep.subr.mxu0 %v691_v0 }
  0x3e   :  { %534 = vmatprep.subr.mxu1 %v691_v0  ;;  %564 = vmatpush3.msra.mxu0 %v257_v28 }
  0x3f   :  { %535 = vmatpush3.msra.mxu1 %v160_v15  ;;  %565 = vmatprep.subr.mxu0 %v691_v0 }
  0x40   :  { %536 = vmatprep.subr.mxu1 %v691_v0  ;;  %566 = vmatpush3.msra.mxu0 %v256_v29 }
  0x41   :  { %537 = vmatpush3.msra.mxu1 %v159_v16  ;;  %567 = vmatprep.subr.mxu0 %v691_v0 }
  0x42   :  { %538 = vmatprep.subr.mxu1 %v691_v0  ;;  %568 = vmatpush3.msra.mxu0 %v255_v30 }
  0x43   :  { %539 = vmatpush3.msra.mxu1 %v158_v17  ;;  %569 = vmatprep.subr.mxu0 %v691_v0 }
  0x44   :  { %540 = vmatprep.subr.mxu1 %v691_v0  ;;  %570 = vmatpush3.msra.mxu0 %v254_v31 }
  0x45   :  { %541 = vmatpush3.msra.mxu1 %v157_v18  ;;  %571 = vmatprep.subr.mxu0 %v691_v0 }
  0x46   :  { %580 = vmatprep.subr.mxu1 %v691_v0  ;;  %572 = vmatpush3.msra.mxu0 %v253_v37 }
  0x47   :  { %573 = vmatprep.subr.mxu0 %v691_v0 }
  0x48   :  { %574 = vmatpush3.msra.mxu0 %v252_v38 }
  0x49   :  { %575 = vmatprep.subr.mxu0 %v691_v0 }
  0x4a   :  { %576 = vmatpush3.msra.mxu0 %v251_v39 }
  0xe8   :  { %v152_v33 = vpop.f32.mrf.mxu0 }
  0xe9   :  { %v153_v34 = vadd.f32 %v446_v32, %v152_v33 }
  0xea   :  { %v509_v35 = vpop.f32.mrf.mxu0 }
  0xeb   :  { %v156_v36 = vmax.f32 %v153_v34, 0.0 }
  0xed   :  { %543 = vmatmul.mubr.f32.vlgmr.msra.gmra.mxu1 %v156_v36 }
  0xee   :  { %612 = vmatprep.mubr.msk.f32.mxu1 %vm692_vm0, %v691_v0  ;;  %581 = vmatpush3.msra.mxu1 %v360_v40 }
  0xef   :  { %582 = vmatprep.subr.mxu1 %v691_v0 }
  0xf0   :  { %583 = vmatpush3.msra.mxu1 %v359_v41 }
  0xf1   :  { %584 = vmatprep.subr.mxu1 %v691_v0 }
  0xf2   :  { %585 = vmatpush3.msra.mxu1 %v358_v42 }
  0xf3   :  { %586 = vmatprep.subr.mxu1 %v691_v0 }
  0xf4   :  { %587 = vmatpush3.msra.mxu1 %v357_v43 }
  0xf5   :  { %588 = vmatprep.subr.mxu1 %v691_v0 }
  0xf6   :  { %589 = vmatpush3.msra.mxu1 %v356_v44 }
  0xf7   :  { %590 = vmatprep.subr.mxu1 %v691_v0 }
  0xf8   :  { %591 = vmatpush3.msra.mxu1 %v355_v45 }
  0xf9   :  { %592 = vmatprep.subr.mxu1 %v691_v0 }
  0xfa   :  { %593 = vmatpush3.msra.mxu1 %v354_v46 }
  0xfb   :  { %594 = vmatprep.subr.mxu1 %v691_v0 }
  0xfc   :  { %595 = vmatpush3.msra.mxu1 %v353_v47 }
  0xfd   :  { %596 = vmatprep.subr.mxu1 %v691_v0 }
  0xfe   :  { %597 = vmatpush3.msra.mxu1 %v352_v48 }
  0xff   :  { %598 = vmatprep.subr.mxu1 %v691_v0 }
 0x100   :  { %599 = vmatpush3.msra.mxu1 %v351_v49 }
 0x101   :  { %600 = vmatprep.subr.mxu1 %v691_v0 }
 0x102   :  { %601 = vmatpush3.msra.mxu1 %v350_v50 }
 0x103   :  { %602 = vmatprep.subr.mxu1 %v691_v0 }
 0x104   :  { %603 = vmatpush3.msra.mxu1 %v349_v51 }
 0x105   :  { %604 = vmatprep.subr.mxu1 %v691_v0 }
 0x106   :  { %605 = vmatpush3.msra.mxu1 %v348_v52 }
 0x107   :  { %606 = vmatprep.subr.mxu1 %v691_v0 }
 0x108   :  { %607 = vmatpush3.msra.mxu1 %v347_v58 }
 0x109   :  { %608 = vmatprep.subr.mxu1 %v691_v0 }
 0x10a   :  { %609 = vmatpush3.msra.mxu1 %v346_v59 }
 0x10b   :  { %610 = vmatprep.subr.mxu1 %v691_v0 }
 0x10c   :  { %611 = vmatpush3.msra.mxu1 %v345_v60 }
 0x1ad   :  { %v246_v54 = vpop.f32.mrf.mxu1 }
 0x1ae   :  { %v247_v55 = vadd.f32 %v449_v53, %v246_v54 }
 0x1af   :  { %v544_v56 = vpop.f32.mrf.mxu1 }
 0x1b0   :  { %v250_v57 = vmax.f32 %v247_v55, 0.0 }
 0x1b2   :  { %578 = vmatmul.mubr.f32.vlgmr.msra.gmra.mxu0 %v250_v57 }
 0x272   :  { %v340_v62 = vpop.f32.mrf.mxu0 }
 0x273   :  { %v341_v63 = vadd.f32 %v450_v61, %v340_v62 }
 0x274   :  { %v579_v1 = vpop.f32.mrf.mxu0 }
 0x275   :  { %v344_v2 = vmax.f32 %v341_v63, 0.0 }
 0x277   :  { %613 = vmatmul.mubr.f32.vlgmr.msra.gmra.mxu1 %v344_v2 }
 0x337   :  { %v434_v4 = vpop.f32.mrf.mxu1 }
 0x338   :  { %v435_v0 = vadd.f32 %v451_v3, %v434_v4 }
 0x339   :  { %v614_v5 = vpop.f32.mrf.mxu1 }
 0x33a   :  { %439 = vst.msk [vmem:[%s929_s9] sm:$0xff] %vm438_vm3, %v435_v0 }
 0x33b   :  { %444 = vsyncpa [#allocation3], 1 }
 0x33c   :  { %445 = vsyncpa [#allocation5], 1 }

</bundles_post_ra>
